<compile_context>
chip_gen: v6e
topology: v6e:2x2x1
jax: 0.10.0
libtpu: 0.0.40
codegen_flags: <defaults>
</compile_context>

<pallas_src>
import functools

import jax
import jax.numpy as jnp
from jax.experimental import pallas as pl
from jax.experimental.pallas import tpu as pltpu


def _se_block_kernel(x_ref, w1t_ref, b1_ref, w2t_ref, b2_ref, o_ref, *, inv_len):
    # AdaptiveAvgPool1d(1): mean over length.  Pool straight from the VMEM ref
    # (do not keep the slab live as a value); accumulate in f32.  inv_len is
    # 1/original_L, so zero-padded tail lanes do not perturb the mean.
    pooled = jnp.sum(x_ref[...], axis=-1, dtype=jnp.float32) * inv_len      # (BT, C)

    # 1x1 Conv1d (C -> Cr) as a tiny MXU matmul, then Swish.
    h = jnp.dot(pooled, w1t_ref[...],
                preferred_element_type=jnp.float32) + b1_ref[...]           # (BT, Cr)
    h = h * jax.nn.sigmoid(h)

    # 1x1 Conv1d (Cr -> C) as a tiny MXU matmul, then Sigmoid -> channel gate.
    # Precision contract: gate math is f32, cast to the input dtype for the
    # final multiply (may differ slightly from a pure-bf16 PyTorch run).
    g = jnp.dot(h, w2t_ref[...],
                preferred_element_type=jnp.float32) + b2_ref[...]           # (BT, C)
    g = jax.nn.sigmoid(g)

    # Re-read x from VMEM (cheap vld) and scale/store in the native dtype.
    # NOTE: on a partial last batch block the padded rows compute garbage
    # gates, but every output row depends ONLY on its own pooled row (no
    # cross-row mixing in the matmuls) and Pallas discards the padded output
    # region, so this is safe.  Do not add batch-statistic math here without
    # handling that padding.
    o_ref[...] = x_ref[...] * g[:, :, None].astype(o_ref.dtype)


def _tpu_config():
    """Generation-aware VMEM / tiling policy."""
    kind = ""
    try:
        kind = jax.devices()[0].device_kind.lower()
    except Exception:
        pass
    if "v6" in kind:
        # v6e: single TC, 128 MiB VMEM (32 MiB scoped default), ~1.4 TB/s HBM.
        return {"slab_budget": 7 << 20, "vmem_limit": 64 << 20, "min_grid": 1}
    if "7x" in kind or "v7" in kind or "tpu7" in kind:
        # v7x: 2 TCs/chip, 64 MiB VMEM per TC, 3.2 TB/s HBM.
        return {"slab_budget": 5 << 20, "vmem_limit": 44 << 20, "min_grid": 4}
    if "v5" in kind:
        # v5e: single TC, 16 MiB scoped default, ~0.8 TB/s HBM.
        return {"slab_budget": 3 << 20, "vmem_limit": 16 << 20, "min_grid": 1}
    # Unknown part: conservative defaults.
    return {"slab_budget": 3 << 20, "vmem_limit": 16 << 20, "min_grid": 1}


def _largest_divisor_leq(n, cap):
    cap = max(1, min(cap, n))
    for d in range(cap, 0, -1):
        if n % d == 0:
            return d
    return 1


def se_block_1d(x, w1, b1, w2, b2, *, block_batch=None):
    """SE block forward.

    x:  (N, C, L)
    w1: (Cr, C)   b1: (Cr, 1)   -- Conv1d(C, Cr, 1) weights (kernel dim squeezed)
    w2: (C, Cr)   b2: (C, 1)    -- Conv1d(Cr, C, 1) weights (kernel dim squeezed)
    """
    n, c, l = x.shape
    cr = w1.shape[0]
    cfg = _tpu_config()

    # --- layout plumbing in the wrapper (not the kernel) ---------------------
    w1t = jnp.transpose(w1)             # (C, Cr)
    w2t = jnp.transpose(w2)             # (Cr, C)
    b1r = jnp.reshape(b1, (1, cr))      # (1, Cr)
    b2r = jnp.reshape(b2, (1, c))       # (1, C)

    # Lane density: pad L to a multiple of 128 so stores are full-width vst.
    l_pad = (-l) % 128
    xp = jnp.pad(x, ((0, 0), (0, 0), (0, l_pad))) if l_pad else x
    lp = l + l_pad

    # --- batch-tile sizing (generation-aware) --------------------------------
    slab_bytes = c * lp * x.dtype.itemsize
    if block_batch is None:
        bt = max(1, int(cfg["slab_budget"] // max(1, slab_bytes)))
        # Megacore: on 2-TC parts target grid length >= 4 (2 TCs x >=2
        # pipelined steps each).  On single-TC v5e/v6e never shrink the tile
        # just to split the grid.
        if cfg["min_grid"] > 1 and n > 1:
            bt = min(bt, max(1, pl.cdiv(n, cfg["min_grid"])))
        bt = min(bt, n)
        # Prefer a bt dividing N (full last block, no masked edge stores),
        # unless the nearest divisor would shrink bt too much (e.g. prime N).
        d = _largest_divisor_leq(n, bt)
        if 2 * d >= bt:
            bt = d
    else:
        bt = max(1, min(block_batch, n))

    # Explicit VMEM limit: Pallas double-buffers input AND output (~4x slab)
    # plus the tiny weight blocks; leave headroom for Mosaic internal scratch.
    weight_bytes = (w1t.size + w2t.size + b1r.size + b2r.size) * w1t.dtype.itemsize
    needed = 4 * bt * slab_bytes + 2 * weight_bytes + (2 << 20)
    vmem_limit = int(min(max(cfg["vmem_limit"], needed), 128 << 20))

    grid = (pl.cdiv(n, bt),)
    kernel = functools.partial(_se_block_kernel, inv_len=1.0 / float(l))

    out = pl.pallas_call(
        kernel,
        out_shape=jax.ShapeDtypeStruct((n, c, lp), x.dtype),
        grid=grid,
        in_specs=[
            pl.BlockSpec((bt, c, lp), lambda i: (i, 0, 0)),   # x: batch-tiled slab
            pl.BlockSpec((c, cr), lambda i: (0, 0)),          # w1^T (constant block)
            pl.BlockSpec((1, cr), lambda i: (0, 0)),          # b1 row
            pl.BlockSpec((cr, c), lambda i: (0, 0)),          # w2^T
            pl.BlockSpec((1, c), lambda i: (0, 0)),           # b2 row
        ],
        out_specs=pl.BlockSpec((bt, c, lp), lambda i: (i, 0, 0)),
        compiler_params=pltpu.CompilerParams(
            dimension_semantics=("parallel",),
            vmem_limit_bytes=vmem_limit,
        ),
        # TODO(synk): pass input_output_aliases={0: 0} when the caller can
        # donate x (footprint/latency cleanup only, not a bandwidth win).
    )(xp, w1t, b1r, w2t, b2r)

    return out[..., :l] if l_pad else out


def se_block_1d_ref(x, w1, b1, w2, b2):
    pooled = jnp.mean(x, axis=-1, keepdims=True)              # (N, C, 1)
    h = jnp.einsum("rc,ncl->nrl", w1, pooled) + b1[None]      # (N, Cr, 1)
    h = h * jax.nn.sigmoid(h)
    g = jnp.einsum("cr,nrl->ncl", w2, h) + b2[None]           # (N, C, 1)
    g = jax.nn.sigmoid(g)
    return x * g


if __name__ == "__main__":
    # Small shapes consistent with the module: batch=4, channels=32 (stem
    # width), length=128 (lane-dense).  se_ratio=0.25 -> Cr=8.
    N, C, L = 4, 32, 128
    se_ratio = 0.25
    Cr = max(1, int(C * se_ratio))

    key = jax.random.PRNGKey(0)
    kx, k1, kb1, k2, kb2 = jax.random.split(key, 5)

    x = jax.random.normal(kx, (N, C, L), dtype=jnp.float32)
    # Conv1d(C, Cr, 1) weights -> (Cr, C); Conv1d(Cr, C, 1) -> (C, Cr).
    w1 = jax.random.normal(k1, (Cr, C), dtype=jnp.float32) * 0.2
    b1 = jax.random.normal(kb1, (Cr, 1), dtype=jnp.float32) * 0.1
    w2 = jax.random.normal(k2, (C, Cr), dtype=jnp.float32) * 0.2
    b2 = jax.random.normal(kb2, (C, 1), dtype=jnp.float32) * 0.1

    out = jax.block_until_ready(se_block_1d(x, w1, b1, w2, b2))
    ref = se_block_1d_ref(x, w1, b1, w2, b2)
    assert out.shape == (N, C, L)
    assert jnp.allclose(out, ref, atol=1e-5, rtol=1e-5)

    # Non-lane-dense length: exercises the pad-to-128 wrapper path.
    L2 = 100
    x2 = jax.random.normal(kx, (N, C, L2), dtype=jnp.float32)
    out2 = jax.block_until_ready(se_block_1d(x2, w1, b1, w2, b2))
    ref2 = se_block_1d_ref(x2, w1, b1, w2, b2)
    assert out2.shape == (N, C, L2)
    assert jnp.allclose(out2, ref2, atol=1e-5, rtol=1e-5)

    print("KERNEL_OK")
</pallas_src>

<mosaic_0001>
module attributes {stable_mosaic.version = 11 : i64} {
  func.func @_se_block_kernel(%arg0: i32, %arg1: memref<4x32x128xf32, #tpu.memory_space<vmem>>, %arg2: memref<32x8xf32, #tpu.memory_space<vmem>>, %arg3: memref<1x8xf32, #tpu.memory_space<vmem>>, %arg4: memref<8x32xf32, #tpu.memory_space<vmem>>, %arg5: memref<1x32xf32, #tpu.memory_space<vmem>>, %arg6: memref<4x32x128xf32, #tpu.memory_space<vmem>>) attributes {dimension_semantics = [#tpu.dimension_semantics<parallel>], iteration_bounds = array<i64: 1>, scalar_prefetch = 0 : i64, scratch_operands = 0 : i64, tpu.core_type = #tpu.core_type<tc>, window_params = [{transform_indices = @transform_0, window_bounds = array<i64: 4, 32, 128>}, {pipeline_mode = #tpu.pipeline_mode<synchronous>, transform_indices = @transform_1, window_bounds = array<i64: 32, 8>}, {pipeline_mode = #tpu.pipeline_mode<synchronous>, transform_indices = @transform_2, window_bounds = array<i64: 1, 8>}, {pipeline_mode = #tpu.pipeline_mode<synchronous>, transform_indices = @transform_3, window_bounds = array<i64: 8, 32>}, {pipeline_mode = #tpu.pipeline_mode<synchronous>, transform_indices = @transform_4, window_bounds = array<i64: 1, 32>}, {transform_indices = @transform_5, window_bounds = array<i64: 4, 32, 128>}]} {
    %c0 = arith.constant 0 : index
    %c0_0 = arith.constant 0 : index
    %c0_1 = arith.constant 0 : index
    %0 = vector.load %arg1[%c0, %c0_0, %c0_1] : memref<4x32x128xf32, #tpu.memory_space<vmem>>, vector<4x32x128xf32>
    %cst = arith.constant dense<0.000000e+00> : vector<4x32xf32>
    %1 = vector.multi_reduction <add>, %0, %cst [2] : vector<4x32x128xf32> to vector<4x32xf32>
    %cst_2 = arith.constant 7.812500e-03 : f32
    %2 = vector.broadcast %cst_2 : f32 to vector<4x32xf32>
    %3 = arith.mulf %1, %2 : vector<4x32xf32>
    %c0_3 = arith.constant 0 : index
    %c0_4 = arith.constant 0 : index
    %4 = vector.load %arg2[%c0_3, %c0_4] : memref<32x8xf32, #tpu.memory_space<vmem>>, vector<32x8xf32>
    %cst_5 = arith.constant dense<0.000000e+00> : vector<4x8xf32>
    %5 = tpu.matmul %3, %4, %cst_5 {dimension_numbers = #tpu.dot_dimension_numbers<[1], [0], [0], [1], [0, 0, 1, 1], [], []>} : vector<4x32xf32>, vector<32x8xf32>, vector<4x8xf32> -> vector<4x8xf32>
    %c0_6 = arith.constant 0 : index
    %c0_7 = arith.constant 0 : index
    %6 = vector.load %arg3[%c0_6, %c0_7] : memref<1x8xf32, #tpu.memory_space<vmem>>, vector<1x8xf32>
    %7 = vector.broadcast %6 : vector<1x8xf32> to vector<4x8xf32>
    %8 = arith.addf %5, %7 : vector<4x8xf32>
    %9 = arith.negf %8 : vector<4x8xf32>
    %10 = math.exp %9 : vector<4x8xf32>
    %cst_8 = arith.constant 1.000000e+00 : f32
    %11 = vector.broadcast %cst_8 : f32 to vector<4x8xf32>
    %12 = arith.addf %11, %10 : vector<4x8xf32>
    %13 = arith.divf %11, %12 : vector<4x8xf32>
    %14 = arith.mulf %8, %13 : vector<4x8xf32>
    %c0_9 = arith.constant 0 : index
    %c0_10 = arith.constant 0 : index
    %15 = vector.load %arg4[%c0_9, %c0_10] : memref<8x32xf32, #tpu.memory_space<vmem>>, vector<8x32xf32>
    %cst_11 = arith.constant dense<0.000000e+00> : vector<4x32xf32>
    %16 = tpu.matmul %14, %15, %cst_11 {dimension_numbers = #tpu.dot_dimension_numbers<[1], [0], [0], [1], [0, 0, 1, 1], [], []>} : vector<4x8xf32>, vector<8x32xf32>, vector<4x32xf32> -> vector<4x32xf32>
    %c0_12 = arith.constant 0 : index
    %c0_13 = arith.constant 0 : index
    %17 = vector.load %arg5[%c0_12, %c0_13] : memref<1x32xf32, #tpu.memory_space<vmem>>, vector<1x32xf32>
    %18 = vector.broadcast %17 : vector<1x32xf32> to vector<4x32xf32>
    %19 = arith.addf %16, %18 : vector<4x32xf32>
    %20 = arith.negf %19 : vector<4x32xf32>
    %21 = math.exp %20 : vector<4x32xf32>
    %cst_14 = arith.constant 1.000000e+00 : f32
    %22 = vector.broadcast %cst_14 : f32 to vector<4x32xf32>
    %23 = arith.addf %22, %21 : vector<4x32xf32>
    %24 = arith.divf %22, %23 : vector<4x32xf32>
    %c0_15 = arith.constant 0 : index
    %c0_16 = arith.constant 0 : index
    %c0_17 = arith.constant 0 : index
    %25 = vector.load %arg1[%c0_15, %c0_16, %c0_17] : memref<4x32x128xf32, #tpu.memory_space<vmem>>, vector<4x32x128xf32>
    %26 = vector.shape_cast %24 : vector<4x32xf32> to vector<4x32x1xf32>
    %27 = vector.broadcast %26 : vector<4x32x1xf32> to vector<4x32x128xf32>
    %28 = arith.mulf %25, %27 : vector<4x32x128xf32>
    %c0_18 = arith.constant 0 : index
    %c0_19 = arith.constant 0 : index
    %c0_20 = arith.constant 0 : index
    %29 = vector.load %arg6[%c0_18, %c0_19, %c0_20] : memref<4x32x128xf32, #tpu.memory_space<vmem>>, vector<4x32x128xf32>
    tpu.vector_store %arg6[%c0_18, %c0_19, %c0_20], %28 {strides = array<i32>} : memref<4x32x128xf32, #tpu.memory_space<vmem>>, vector<4x32x128xf32>,
    return
  }
  func.func @transform_0(%arg0: i32) -> (i32, i32, i32) {
    %c0_i32 = arith.constant 0 : i32
    %c0_i32_0 = arith.constant 0 : i32
    %c0_i32_1 = arith.constant 0 : i32
    return %arg0, %c0_i32, %c0_i32_0 : i32, i32, i32
  }
  func.func @transform_1(%arg0: i32) -> (i32, i32) {
    %c0_i32 = arith.constant 0 : i32
    %c0_i32_0 = arith.constant 0 : i32
    %c0_i32_1 = arith.constant 0 : i32
    return %c0_i32, %c0_i32_0 : i32, i32
  }
  func.func @transform_2(%arg0: i32) -> (i32, i32) {
    %c0_i32 = arith.constant 0 : i32
    %c0_i32_0 = arith.constant 0 : i32
    %c0_i32_1 = arith.constant 0 : i32
    return %c0_i32, %c0_i32_0 : i32, i32
  }
  func.func @transform_3(%arg0: i32) -> (i32, i32) {
    %c0_i32 = arith.constant 0 : i32
    %c0_i32_0 = arith.constant 0 : i32
    %c0_i32_1 = arith.constant 0 : i32
    return %c0_i32, %c0_i32_0 : i32, i32
  }
  func.func @transform_4(%arg0: i32) -> (i32, i32) {
    %c0_i32 = arith.constant 0 : i32
    %c0_i32_0 = arith.constant 0 : i32
    %c0_i32_1 = arith.constant 0 : i32
    return %c0_i32, %c0_i32_0 : i32, i32
  }
  func.func @transform_5(%arg0: i32) -> (i32, i32, i32) {
    %c0_i32 = arith.constant 0 : i32
    %c0_i32_0 = arith.constant 0 : i32
    %c0_i32_1 = arith.constant 0 : i32
    return %arg0, %c0_i32, %c0_i32_0 : i32, i32, i32
  }
}

</mosaic_0001>

<bundles_post_ra>
// kernel: tpu_custom_call.1
= control target key start
LH: loop header
LB: loop body
LE: loop exit
PB: predicated region body
PF: predicated region fallthrough
CT: control target
= control target key end

     0   :  { %10 = vsyncpa [#allocation3], 0  ;;  %s752_s0 = inlined_call_operand.hbm [shape: f32[4,32,128], index: 0, kind: input, shape index: {}]   ;;  %s753_s1 = inlined_call_operand.vmem [shape: f32[32,8], index: 1, kind: input, shape index: {}]   ;;  %s754_s2 = inlined_call_operand.vmem [shape: f32[1,8], index: 2, kind: input, shape index: {}]   ;;  %s755_s3 = inlined_call_operand.vmem [shape: f32[8,32], index: 3, kind: input, shape index: {}]   ;;  %s756_s4 = inlined_call_operand.vmem [shape: f32[1,32], index: 4, kind: input, shape index: {}]   ;;  %s757_s5 = inlined_call_operand.hbm [shape: f32[4,32,128], index: 5, kind: output, shape index: {}]  }
   0x1   :  { %11 = vsyncpa [#allocation4], 0  ;;  %s596_s18 = smov [#allocation2]  }
   0x2   :  { %s17_s19 = sshll.u32 %s596_s18, 4  ;;  %s18_s19 = int_to_ptr.vmem [resolvable:$true] %s17_s19 }
   0x3   :  { %s560_s20 = scalar_lea.vmem %s18_s19, 2048  ;;  %p565_p1 = scmp.lt.s32.totalorder %s18_s19, %s18_s19 }
   0x4   :  { %p561_p0 = scmp.ne.s32.totalorder %s18_s19, %s560_s20  ;;  %p566_p2 = scmp.lt.s32.totalorder %s560_s20, %s560_s20 }
   0x6   :  { %p567_p3 = por %p566_p2, %p565_p1 }
   0x8   :  { %p568_p4 = pnand %p567_p3, %p561_p0 }
   0xa   :  { %571 = shalt.err (!%p568_p4)
}
   0xb   :  { %s597_s21 = smov 128   ;;  %s598_s22 = smov 8  }
   0xc   :  { %23 = dma.hbm_to_vmem [thread:$0]  %s752_s0, 2048, %s18_s19, [#allocation3], %s597_s21, %s597_s21, %s598_s22  }
   0xd   :  { %592 = dma.done.wait [#allocation3], 2048  }
   0xe   :  { %593 = vsyncadd [#allocation3], 4294965248  ;;  %v638_v0 = vld [vmem:[#allocation2 + $0x20] sm:$0xff]  ;;  %v644_v2 = vld [vmem:[#allocation2 + $0x28] sm:$0xff]  ;;  %v599_v16 = vmov 0.0   ;;  %vm600_vm0 = vmmov 0   ;;  %v126_v27 = vlaneseq }
   0xf   :  { %v640_v1 = vld [vmem:[#allocation2] sm:$0xff]  ;;  %59 = vadd.xlane.f32.xlu1 %v638_v0  ;;  %v646_v3 = vld [vmem:[#allocation2 + $0x8] sm:$0xff]  ;;  %v650_v4 = vld [vmem:[#allocation2 + $0x30] sm:$0xff]  ;;  %522 = vmatprep.subr.mxu0 %v599_v16  ;;  %vm137_vm1 = vcmask 130112   ;;  %vm144_vm2 = vcmask 195712   ;;  %vm151_vm3 = vcmask 261312  }
  0x10   :  { %51 = vadd.xlane.f32.xlu0 %v640_v1  ;;  %v652_v5 = vld [vmem:[#allocation2 + $0x10] sm:$0xff]  ;;  %v656_v6 = vld [vmem:[#allocation2 + $0x48] sm:$0xff]  ;;  %v658_v7 = vld [vmem:[#allocation2 + $0x40] sm:$0xff]  ;;  %533 = vmatprep.subr.mxu1 %v599_v16  ;;  %v127_v30 = vand.u32 127, %v126_v27  ;;  %v698_v31 = vshrl.u32 %v126_v27, 7  ;;  %vm210_vm4 = vcmask 1041409  }
  0x11   :  { %v662_v8 = vld [vmem:[#allocation2 + $0x38] sm:$0xff]  ;;  %v668_v10 = vld [vmem:[#allocation2 + $0x60] sm:$0xff]  ;;  %v670_v11 = vld [vmem:[#allocation2 + $0x50] sm:$0xff]  ;;  %530 = vmatprep.mubr.msk.f32.mxu0 %vm600_vm0, %v599_v16  ;;  %535 = vmatprep.mubr.msk.f32.mxu1 %vm600_vm0, %v599_v16  ;;  %vm212_vm5 = vcmask 1042434   ;;  %vm214_vm6 = vcmask 1043459   ;;  %vm216_vm7 = vcmask 261120  }
  0x12   :  { %v664_v9 = vld [vmem:[#allocation2 + $0x18] sm:$0xff]  ;;  %v676_v13 = vld [vmem:[#allocation2 + $0x68] sm:$0xff]  ;;  %v680_v14 = vld [vmem:[#allocation2 + $0x70] sm:$0xff]  ;;  %v132_v32 = vadd.s32 4294967288, %v127_v30  ;;  %v139_v33 = vadd.s32 4294967280, %v127_v30  ;;  %v130_v36 = vsub.s32 %v127_v30, %v698_v31  ;;  %v146_v37 = vadd.s32 4294967272, %v127_v30 }
  0x13   :  { %61 = vadd.xlane.f32.xlu1 %v644_v2  ;;  %v674_v12 = vld [vmem:[#allocation2 + $0x58] sm:$0xff]  ;;  %v101_v18 = vld [vmem:[%s753_s1 + $0x10] sm:$0xff]  ;;  %v100_v19 = vld [vmem:[%s753_s1 + $0x8] sm:$0xff]  ;;  %vm304_vm8 = vcmask 64512  }
  0x14   :  { %53 = vadd.xlane.f32.xlu0 %v646_v3  ;;  %v682_v15 = vld [vmem:[#allocation2 + $0x78] sm:$0xff]  ;;  %v99_v20 = vld [vmem:[%s753_s1] sm:$0xff]  ;;  %v135_v39 = vsub.s32 %v132_v32, %v698_v31  ;;  %v142_v41 = vsub.s32 %v139_v33, %v698_v31  ;;  %v149_v50 = vsub.s32 %v146_v37, %v698_v31 }
  0x15   :  { %v102_v17 = vld [vmem:[%s753_s1 + $0x18] sm:$0xff] }
  0x16   :  { %523 = vmatpush3.msra.mxu0 %v102_v17 }
  0x17   :  { %63 = vadd.xlane.f32.xlu1 %v650_v4  ;;  %524 = vmatprep.subr.mxu0 %v599_v16 }
  0x18   :  { %55 = vadd.xlane.f32.xlu0 %v652_v5  ;;  %525 = vmatpush3.msra.mxu0 %v101_v18 }
  0x19   :  { %526 = vmatprep.subr.mxu0 %v599_v16 }
  0x1a   :  { %527 = vmatpush3.msra.mxu0 %v100_v19 }
  0x1b   :  { %69 = vadd.xlane.f32.xlu1 %v656_v6  ;;  %528 = vmatprep.subr.mxu0 %v599_v16 }
  0x1c   :  { %67 = vadd.xlane.f32.xlu0 %v658_v7  ;;  %529 = vmatpush3.msra.mxu0 %v99_v20 }
  0x1f   :  { %65 = vadd.xlane.f32.xlu1 %v662_v8 }
  0x20   :  { %57 = vadd.xlane.f32.xlu0 %v664_v9 }
  0x23   :  { %75 = vadd.xlane.f32.xlu1 %v668_v10 }
  0x24   :  { %71 = vadd.xlane.f32.xlu0 %v670_v11 }
  0x27   :  { %73 = vadd.xlane.f32.xlu1 %v674_v12 }
  0x28   :  { %77 = vadd.xlane.f32.xlu0 %v676_v13 }
  0x2b   :  { %81 = vadd.xlane.f32.xlu1 %v682_v15 }
  0x2c   :  { %79 = vadd.xlane.f32.xlu0 %v680_v14 }
  0x98   :  { %v60_v21 = vpop.xlane.xlu1 %59 }
  0x99   :  { %v52_v22 = vpop.xlane.xlu0 %51  ;;  %v87_v38 = vmul.f32 0.0078125, %v60_v21 }
  0x9a   :  { %v83_v42 = vmul.f32 0.0078125, %v52_v22 }
  0x9b   :  { %v156_v54 = vrot.slane %v87_v38, %v130_v36 }
  0x9c   :  { %v62_v23 = vpop.xlane.xlu1 %61  ;;  %v131_v56 = vrot.slane %v83_v42, %v130_v36 }
  0x9d   :  { %v54_v24 = vpop.xlane.xlu0 %53  ;;  %v88_v40 = vmul.f32 0.0078125, %v62_v23 }
  0x9e   :  { %v84_v43 = vmul.f32 0.0078125, %v54_v24 }
  0x9f   :  { %v160_v55 = vrot.slane %v88_v40, %v135_v39 }
  0xa0   :  { %v64_v25 = vpop.xlane.xlu1 %63  ;;  %v136_v57 = vrot.slane %v84_v43, %v135_v39 }
  0xa1   :  { %v56_v26 = vpop.xlane.xlu0 %55  ;;  %v89_v44 = vmul.f32 0.0078125, %v64_v25  ;;  %v161_v22 = vsel %vm137_vm1, %v160_v55, %v156_v54 }
  0xa2   :  { %v85_v45 = vmul.f32 0.0078125, %v56_v26  ;;  %v138_v24 = vsel %vm137_vm1, %v136_v57, %v131_v56  ;;  %v512_v57 = vld [vmem:[%s756_s4] ss:$0 sm:$0xff] }
  0xa3   :  { %v165_v58 = vrot.slane %v89_v44, %v142_v41 }
  0xa4   :  { %v70_v28 = vpop.xlane.xlu1 %69  ;;  %v143_v59 = vrot.slane %v85_v45, %v142_v41 }
  0xa5   :  { %v68_v29 = vpop.xlane.xlu0 %67  ;;  %v92_v48 = vmul.f32 0.0078125, %v70_v28  ;;  %v166_v25 = vsel %vm144_vm2, %v165_v58, %v161_v22 }
  0xa6   :  { %v91_v49 = vmul.f32 0.0078125, %v68_v29  ;;  %v145_v29 = vsel %vm144_vm2, %v143_v59, %v138_v24 }
  0xa7   :  { %v179_v62 = vrot.slane %v92_v48, %v135_v39 }
  0xa8   :  { %v66_v34 = vpop.xlane.xlu1 %65  ;;  %v175_v63 = vrot.slane %v91_v49, %v130_v36 }
  0xa9   :  { %v58_v35 = vpop.xlane.xlu0 %57  ;;  %v90_v51 = vmul.f32 0.0078125, %v66_v34 }
  0xaa   :  { %v86_v52 = vmul.f32 0.0078125, %v58_v35  ;;  %v180_v30 = vsel %vm137_vm1, %v179_v62, %v175_v63 }
  0xab   :  { %v170_v18 = vrot.slane %v90_v51, %v149_v50 }
  0xac   :  { %v76_v46 = vpop.xlane.xlu1 %75  ;;  %v150_v19 = vrot.slane %v86_v52, %v149_v50 }
  0xad   :  { %v72_v47 = vpop.xlane.xlu0 %71  ;;  %v95_v20 = vmul.f32 0.0078125, %v76_v46  ;;  %v171_v34 = vsel %vm151_vm3, %v170_v18, %v166_v25 }
  0xae   :  { %v93_v53 = vmul.f32 0.0078125, %v72_v47  ;;  %v152_v35 = vsel %vm151_vm3, %v150_v19, %v145_v29  ;;  %v405_v19 = vsub.s32 1, %v698_v31 }
  0xaf   :  { %v194_v37 = vrot.slane %v95_v20, %v130_v36  ;;  %v211_v45 = vsel %vm210_vm4, %v171_v34, %v152_v35  ;;  %v296_v36 = vld [vmem:[%s755_s3] sm:$0xff] }
  0xb0   :  { %v74_v60 = vpop.xlane.xlu1 %73  ;;  %v184_v21 = vrot.slane %v93_v53, %v142_v41  ;;  %534 = vmatpush3.msra.mxu1 %v296_v36 }
  0xb1   :  { %v78_v61 = vpop.xlane.xlu0 %77  ;;  %v94_v16 = vmul.f32 0.0078125, %v74_v60 }
  0xb2   :  { %v96_v17 = vmul.f32 0.0078125, %v78_v61  ;;  %v185_v38 = vsel %vm144_vm2, %v184_v21, %v180_v30  ;;  %v424_v21 = vsub.s32 2, %v698_v31 }
  0xb3   :  { %v189_v23 = vrot.slane %v94_v16, %v149_v50  ;;  %v386_v16 = vsub.s32 0, %v698_v31 }
  0xb4   :  { %v198_v26 = vrot.slane %v96_v17, %v135_v39  ;;  %v82_v28 = vpop.xlane.xlu1 %81 }
  0xb5   :  { %v80_v27 = vpop.xlane.xlu0 %79  ;;  %v98_v33 = vmul.f32 0.0078125, %v82_v28  ;;  %v190_v40 = vsel %vm151_vm3, %v189_v23, %v185_v38  ;;  %v443_v23 = vsub.s32 3, %v698_v31 }
  0xb6   :  { %v97_v32 = vmul.f32 0.0078125, %v80_v27  ;;  %v199_v43 = vsel %vm137_vm1, %v198_v26, %v194_v37  ;;  %v213_v47 = vsel %vm212_vm5, %v190_v40, %v211_v45 }
  0xb7   :  { %v208_v39 = vrot.slane %v98_v33, %v149_v50 }
  0xb8   :  { %v203_v42 = vrot.slane %v97_v32, %v142_v41  ;;  %v509_v41 = vld [vmem:[%s754_s2] ss:$0 sm:$0xff]  ;;  %s601_s2 = smov [#allocation5]  }
  0xb9   :  { %s497_s3 = sshll.u32 %s601_s2, 4  ;;  %s498_s3 = int_to_ptr.vmem [resolvable:$true] %s497_s3 }
  0xba   :  { %v204_v44 = vsel %vm144_vm2, %v203_v42, %v199_v43  ;;  %s572_s4 = scalar_lea.vmem %s498_s3, 2048  ;;  %p577_p6 = scmp.lt.s32.totalorder %s498_s3, %s498_s3 }
  0xbb   :  { %v209_v46 = vsel %vm151_vm3, %v208_v39, %v204_v44  ;;  %p573_p5 = scmp.ne.s32.totalorder %s498_s3, %s572_s4  ;;  %p578_p7 = scmp.lt.s32.totalorder %s572_s4, %s572_s4 }
  0xbc   :  { %v215_v48 = vsel %vm214_vm6, %v209_v46, %v213_v47 }
  0xbd   :  { %531 = vmatmul.mubr.msk.f32.vlgmr.msra.gmra.mxu0 %vm216_vm7, %v215_v48  ;;  %p579_p8 = por %p578_p7, %p577_p6 }
  0xbf   :  { %p580_p9 = pnand %p579_p8, %p573_p5 }
 0x17d   :  { %v285_v49 = vpop.f32.mrf.mxu0 }
 0x17e   :  { %v286_v50 = vadd.f32 %v509_v41, %v285_v49 }
 0x17f   :  { %v532_v51 = vpop.f32.mrf.mxu0 }
 0x180   :  { %v511_v52 = vmul.f32 -1.442695, %v286_v50 }
 0x182   :  { %544 = vpow2.f32 %v511_v52 }
 0x18f   :  { %v545_v53 = vpop.eup %544 }
 0x190   :  { %v292_v54 = vadd.f32 1.0, %v545_v53 }
 0x192   :  { %546 = vrcp.f32 %v292_v54 }
 0x19f   :  { %v547_v55 = vpop.eup %546 }
 0x1a0   :  { %v295_v56 = vmul.f32 %v547_v55, %v286_v50 }
 0x1a2   :  { %536 = vmatmul.mubr.msk.f32.vlgmr.msra.gmra.mxu1 %vm304_vm8, %v295_v56 }
 0x262   :  { %v374_v58 = vpop.f32.mrf.mxu1 }
 0x263   :  { %v375_v59 = vadd.f32 %v512_v57, %v374_v58 }
 0x264   :  { %v537_v60 = vpop.f32.mrf.mxu1 }
 0x265   :  { %v514_v61 = vmul.f32 -1.442695, %v375_v59 }
 0x267   :  { %548 = vpow2.f32 %v514_v61 }
 0x274   :  { %v549_v62 = vpop.eup %548 }
 0x275   :  { %v381_v63 = vadd.f32 1.0, %v549_v62 }
 0x277   :  { %550 = vrcp.f32 %v381_v63 }
 0x284   :  { %v551_v17 = vpop.eup %550 }
 0x285   :  { %v387_v18 = vrot.slane %v551_v17, %v386_v16  ;;  %v406_v20 = vrot.slane %v551_v17, %v405_v19  ;;  %v425_v22 = vrot.slane %v551_v17, %v424_v21  ;;  %v444_v24 = vrot.slane %v551_v17, %v443_v23 }
 0x287   :  { %393 = vbcast.lane.b32.xlu1 %v387_v18, 264  ;;  %389 = vbcast.lane.b32.xlu0 %v387_v18, 256 }
 0x28b   :  { %397 = vbcast.lane.b32.xlu1 %v387_v18, 272  ;;  %408 = vbcast.lane.b32.xlu0 %v406_v20, 256 }
 0x28f   :  { %401 = vbcast.lane.b32.xlu1 %v387_v18, 280  ;;  %416 = vbcast.lane.b32.xlu0 %v406_v20, 272 }
 0x293   :  { %412 = vbcast.lane.b32.xlu1 %v406_v20, 264  ;;  %427 = vbcast.lane.b32.xlu0 %v425_v22, 256 }
 0x297   :  { %420 = vbcast.lane.b32.xlu1 %v406_v20, 280  ;;  %435 = vbcast.lane.b32.xlu0 %v425_v22, 272 }
 0x29b   :  { %431 = vbcast.lane.b32.xlu1 %v425_v22, 264  ;;  %446 = vbcast.lane.b32.xlu0 %v444_v24, 256 }
 0x29f   :  { %439 = vbcast.lane.b32.xlu1 %v425_v22, 280  ;;  %454 = vbcast.lane.b32.xlu0 %v444_v24, 272 }
 0x2a3   :  { %450 = vbcast.lane.b32.xlu1 %v444_v24, 264 }
 0x2a7   :  { %458 = vbcast.lane.b32.xlu1 %v444_v24, 280 }
 0x2f9   :  { %v394_v25 = vpop.permute.xlu1 %393  ;;  %v390_v26 = vpop.permute.xlu0 %389 }
 0x2fa   :  { %v461_v27 = vmul.f32 %v394_v25, %v646_v3  ;;  %v460_v28 = vmul.f32 %v390_v26, %v640_v1 }
 0x2fc   :  { %477 = vst [vmem:[#allocation5 + $0x8] sm:$0xff] %v461_v27  ;;  %476 = vst [vmem:[#allocation5] sm:$0xff] %v460_v28 }
 0x2fd   :  { %v398_v29 = vpop.permute.xlu1 %397  ;;  %v409_v30 = vpop.permute.xlu0 %408 }
 0x2fe   :  { %v462_v31 = vmul.f32 %v398_v29, %v652_v5  ;;  %v464_v32 = vmul.f32 %v409_v30, %v638_v0 }
 0x300   :  { %478 = vst [vmem:[#allocation5 + $0x10] sm:$0xff] %v462_v31  ;;  %480 = vst [vmem:[#allocation5 + $0x20] sm:$0xff] %v464_v32 }
 0x301   :  { %v402_v33 = vpop.permute.xlu1 %401  ;;  %v417_v34 = vpop.permute.xlu0 %416 }
 0x302   :  { %v463_v35 = vmul.f32 %v402_v33, %v664_v9  ;;  %v466_v37 = vmul.f32 %v417_v34, %v650_v4 }
 0x304   :  { %479 = vst [vmem:[#allocation5 + $0x18] sm:$0xff] %v463_v35  ;;  %482 = vst [vmem:[#allocation5 + $0x30] sm:$0xff] %v466_v37 }
 0x305   :  { %v413_v3 = vpop.permute.xlu1 %412  ;;  %v428_v1 = vpop.permute.xlu0 %427 }
 0x306   :  { %v465_v38 = vmul.f32 %v413_v3, %v644_v2  ;;  %v468_v40 = vmul.f32 %v428_v1, %v658_v7 }
 0x308   :  { %481 = vst [vmem:[#allocation5 + $0x28] sm:$0xff] %v465_v38  ;;  %484 = vst [vmem:[#allocation5 + $0x40] sm:$0xff] %v468_v40 }
 0x309   :  { %v421_v5 = vpop.permute.xlu1 %420  ;;  %v436_v0 = vpop.permute.xlu0 %435 }
 0x30a   :  { %v467_v42 = vmul.f32 %v421_v5, %v662_v8  ;;  %v470_v39 = vmul.f32 %v436_v0, %v670_v11 }
 0x30c   :  { %483 = vst [vmem:[#allocation5 + $0x38] sm:$0xff] %v467_v42  ;;  %486 = vst [vmem:[#allocation5 + $0x50] sm:$0xff] %v470_v39 }
 0x30d   :  { %v432_v9 = vpop.permute.xlu1 %431  ;;  %v447_v4 = vpop.permute.xlu0 %446 }
 0x30e   :  { %v469_v43 = vmul.f32 %v432_v9, %v656_v6  ;;  %v472_v44 = vmul.f32 %v447_v4, %v668_v10 }
 0x310   :  { %485 = vst [vmem:[#allocation5 + $0x48] sm:$0xff] %v469_v43  ;;  %488 = vst [vmem:[#allocation5 + $0x60] sm:$0xff] %v472_v44 }
 0x311   :  { %v440_v2 = vpop.permute.xlu1 %439  ;;  %v455_v7 = vpop.permute.xlu0 %454 }
 0x312   :  { %v471_v45 = vmul.f32 %v440_v2, %v674_v12  ;;  %v474_v46 = vmul.f32 %v455_v7, %v680_v14 }
 0x314   :  { %487 = vst [vmem:[#allocation5 + $0x58] sm:$0xff] %v471_v45  ;;  %490 = vst [vmem:[#allocation5 + $0x70] sm:$0xff] %v474_v46 }
 0x315   :  { %v451_v8 = vpop.permute.xlu1 %450 }
 0x316   :  { %v473_v11 = vmul.f32 %v451_v8, %v676_v13 }
 0x318   :  { %489 = vst [vmem:[#allocation5 + $0x68] sm:$0xff] %v473_v11 }
 0x319   :  { %v459_v47 = vpop.permute.xlu1 %458 }
 0x31a   :  { %v475_v6 = vmul.f32 %v459_v47, %v682_v15 }
 0x31c   :  { %491 = vst [vmem:[#allocation5 + $0x78] sm:$0xff] %v475_v6 }
 0x31d   :  { %583 = shalt.err (!%p580_p9)
}
 0x31e   :  { %503 = dma.vmem_to_hbm [thread:$0]  %s498_s3, 2048, %s757_s5, [#allocation4], %s597_s21, %s597_s21, %s598_s22  }
 0x31f   :  { %594 = dma.done.wait [#allocation4], 2048  }
 0x320   :  { %595 = vsyncadd [#allocation4], 4294965248 }
 0x321   :  { %507 = vsyncpa [#allocation3], 1 }
 0x322   :  { %508 = vsyncpa [#allocation4], 1 }

</bundles_post_ra>
